<compile_context>
chip_gen: v7x
topology: tpu7x:2x2x1
jax: 0.10.0
libtpu: 0.0.40
codegen_flags: <defaults>
</compile_context>

<pallas_src>
import functools
import math

import jax
import jax.numpy as jnp
from jax.experimental import pallas as pl
from jax.experimental.pallas import tpu as pltpu


def _interp_matrix(n_out: int, n_in: int) -> jnp.ndarray:
    """Row-stochastic bilinear interpolation matrix (align_corners=True), f32."""
    if n_out == 1 or n_in == 1:
        w = jnp.zeros((n_out, n_in), dtype=jnp.float32)
        return w.at[:, 0].set(1.0)
    src = jnp.arange(n_out, dtype=jnp.float32) * (n_in - 1) / (n_out - 1)
    lo = jnp.clip(jnp.floor(src).astype(jnp.int32), 0, n_in - 2)
    frac = src - lo.astype(jnp.float32)
    rows = jnp.arange(n_out)
    w = jnp.zeros((n_out, n_in), dtype=jnp.float32)
    w = w.at[rows, lo].add(1.0 - frac)
    w = w.at[rows, lo + 1].add(frac)
    return w


def _fused_kernel(x_ref, w_ref, o_ref):
    # x_ref: (C_BLK, H_in*W_in)       batch of flattened (n, c) slabs
    # w_ref: (H_in*W_in, H_out*W_out) fused bilinear weights = kron(Wh, Ww).T
    # o_ref: (C_BLK, H_out*W_out)     lane-dense output (last dim multiple of 128)
    o_ref[...] = jnp.dot(
        x_ref[...], w_ref[...], preferred_element_type=jnp.float32
    ).astype(o_ref.dtype)


def _separable_kernel(x_ref, wh_ref, wwt_ref, o_ref):
    # Fallback for large images where the fused kron matrix would not fit VMEM.
    # x_ref: (C_BLK, H_in, W_in); wh_ref: (H_out, H_in); wwt_ref: (W_in, W_out)
    t = jnp.einsum("oh,chw->cow", wh_ref[...], x_ref[...],
                   preferred_element_type=jnp.float32)
    o = jnp.einsum("cow,wp->cop", t, wwt_ref[...].astype(jnp.float32),
                   preferred_element_type=jnp.float32)
    o_ref[...] = o.astype(o_ref.dtype)


def _choose_c_blk(total: int, in_slab_bytes: int, out_slab_bytes: int) -> int:
    # ~2 MiB of combined (in + out) payload per block: well past the measured
    # ~85%-of-roofline tile size, yet tiny vs VMEM even double-buffered on v7x.
    budget = 2 * 1024 * 1024
    c_blk = max(1, budget // max(1, in_slab_bytes + out_slab_bytes))
    if total >= 2:
        # Keep at least 2 grid steps so v7x's two TensorCores both get work.
        c_blk = min(c_blk, pl.cdiv(total, 2))
    c_blk = min(c_blk, total)
    if c_blk >= 8:
        c_blk -= c_blk % 8  # sublane-aligned M when it doesn't cost grid steps
    return max(1, int(c_blk))


@functools.partial(jax.jit, static_argnames=("scale_factor",))
def upsampling_bilinear2d(x: jnp.ndarray, scale_factor: float = 2.0) -> jnp.ndarray:
    """x: (N, C, H, W) -> (N, C, floor(H*sf), floor(W*sf)), bilinear, align_corners=True."""
    n, c, h_in, w_in = x.shape
    h_out = int(math.floor(h_in * scale_factor + 1e-9))
    w_out = int(math.floor(w_in * scale_factor + 1e-9))

    hw_in = h_in * w_in
    hw_out = h_out * w_out
    total = n * c
    itemsize = jnp.dtype(x.dtype).itemsize
    # Keep bf16 inputs in bf16 (halves HBM bytes; f32 accumulation in the MXU).
    w_dtype = jnp.bfloat16 if x.dtype == jnp.bfloat16 else jnp.float32
    w_itemsize = jnp.dtype(w_dtype).itemsize

    c_blk = _choose_c_blk(total, hw_in * itemsize, hw_out * itemsize)
    g = pl.cdiv(total, c_blk)
    padded = g * c_blk

    wh = _interp_matrix(h_out, h_in)   # (H_out, H_in)
    ww = _interp_matrix(w_out, w_in)   # (W_out, W_in)

    # Fused-kron path whenever the fused weight comfortably fits in VMEM.
    use_fused = hw_in * hw_out * w_itemsize <= 16 * 1024 * 1024

    if use_fused:
        # W_full[ih*W_in+iw, oh*W_out+ow] = Wh[oh,ih] * Ww[ow,iw]
        w_full = jnp.kron(wh, ww).T.astype(w_dtype)        # (H_in*W_in, H_out*W_out)

        x2 = x.reshape(total, hw_in)
        if padded != total:
            x2 = jnp.pad(x2, ((0, padded - total), (0, 0)))
        x3 = x2.reshape(g, c_blk, hw_in)

        need = 2 * c_blk * (hw_in + hw_out) * itemsize + 2 * hw_in * hw_out * w_itemsize
        vmem_limit = int(min(64 * 2**20, max(2 * need + (2 << 20), 16 * 2**20)))

        out = pl.pallas_call(
            _fused_kernel,
            out_shape=jax.ShapeDtypeStruct((g, c_blk, hw_out), x.dtype),
            grid_spec=pltpu.PrefetchScalarGridSpec(
                num_scalar_prefetch=0,
                grid=(g,),
                in_specs=[
                    pl.BlockSpec((pl.Squeezed(), c_blk, hw_in), lambda i: (i, 0, 0)),
                    pl.BlockSpec((hw_in, hw_out), lambda i: (0, 0)),  # resident weight
                ],
                out_specs=pl.BlockSpec((pl.Squeezed(), c_blk, hw_out),
                                       lambda i: (i, 0, 0)),
            ),
            compiler_params=pltpu.CompilerParams(
                dimension_semantics=("parallel",),
                vmem_limit_bytes=vmem_limit),
        )(x3, w_full)
        out = out.reshape(padded, h_out, w_out)
    else:
        wh_c = wh.astype(w_dtype)
        wwt = ww.T.astype(w_dtype)                          # (W_in, W_out)

        x2 = x.reshape(total, h_in, w_in)
        if padded != total:
            x2 = jnp.pad(x2, ((0, padded - total), (0, 0), (0, 0)))
        x4 = x2.reshape(g, c_blk, h_in, w_in)

        need = (2 * c_blk * (hw_in + hw_out) * itemsize
                + 2 * (h_out * h_in + w_in * w_out) * w_itemsize
                + c_blk * h_in * w_out * 4)
        vmem_limit = int(min(64 * 2**20, max(2 * need + (2 << 20), 16 * 2**20)))

        out = pl.pallas_call(
            _separable_kernel,
            out_shape=jax.ShapeDtypeStruct((g, c_blk, h_out, w_out), x.dtype),
            grid_spec=pltpu.PrefetchScalarGridSpec(
                num_scalar_prefetch=0,
                grid=(g,),
                in_specs=[
                    pl.BlockSpec((pl.Squeezed(), c_blk, h_in, w_in),
                                 lambda i: (i, 0, 0, 0)),
                    pl.BlockSpec((h_out, h_in), lambda i: (0, 0)),
                    pl.BlockSpec((w_in, w_out), lambda i: (0, 0)),
                ],
                out_specs=pl.BlockSpec((pl.Squeezed(), c_blk, h_out, w_out),
                                       lambda i: (i, 0, 0, 0)),
            ),
            compiler_params=pltpu.CompilerParams(
                dimension_semantics=("parallel",),
                vmem_limit_bytes=vmem_limit),
        )(x4, wh_c, wwt)
        out = out.reshape(padded, h_out, w_out)

    if padded != total:
        out = out[:total]
    return out.reshape(n, c, h_out, w_out)


def _reference(x, scale_factor=2.0):
    """Pure-JAX reference of F.interpolate(..., 'bilinear', align_corners=True)."""
    n, c, h_in, w_in = x.shape
    h_out = int(math.floor(h_in * scale_factor + 1e-9))
    w_out = int(math.floor(w_in * scale_factor + 1e-9))
    wh = _interp_matrix(h_out, h_in)
    ww = _interp_matrix(w_out, w_in)
    return jnp.einsum("oh,nchw,pw->ncop", wh, x.astype(jnp.float32), ww)


if __name__ == "__main__":
    key = jax.random.PRNGKey(0)
    x = jax.random.normal(key, (2, 4, 16, 16), dtype=jnp.float32)

    out = upsampling_bilinear2d(x, scale_factor=2.0)
    out = jax.block_until_ready(out)
    assert out.shape == (2, 4, 32, 32), out.shape

    ref = _reference(x, 2.0)
    assert jnp.allclose(out, ref, atol=1e-5, rtol=1e-5), \
        float(jnp.max(jnp.abs(out - ref)))

    # bf16 path: operands stay bf16, f32 accumulation; looser tolerance.
    x_bf16 = x.astype(jnp.bfloat16)
    out_bf16 = jax.block_until_ready(upsampling_bilinear2d(x_bf16, scale_factor=2.0))
    assert out_bf16.dtype == jnp.bfloat16
    assert jnp.allclose(out_bf16.astype(jnp.float32), ref, atol=5e-2, rtol=5e-2), \
        float(jnp.max(jnp.abs(out_bf16.astype(jnp.float32) - ref)))

    print("KERNEL_OK")
</pallas_src>

<mosaic_0001>
module attributes {stable_mosaic.version = 11 : i64} {
  func.func private @main(%arg0: i32) attributes {dimension_semantics = [#tpu.dimension_semantics<core_parallel>], iteration_bounds = array<i64: 2>, tpu.core_type = #tpu.core_type<sc_scalar_subcore>, window_params = []} {
    return
  }
}

module attributes {stable_mosaic.version = 11 : i64} {
  func.func private @main(%arg0: i32) attributes {dimension_semantics = [#tpu.dimension_semantics<core_parallel>], iteration_bounds = array<i64: 2>, tpu.core_type = #tpu.core_type<sc_scalar_subcore>, window_params = []} {
    return
  }
}

module attributes {stable_mosaic.version = 11 : i64} {
  func.func @_fused_kernel(%arg0: i32, %arg1: memref<1x4x256xf32, #tpu.memory_space<vmem>>, %arg2: memref<256x1024xf32, #tpu.memory_space<vmem>>, %arg3: memref<1x4x1024xf32, #tpu.memory_space<vmem>>) attributes {dimension_semantics = [#tpu.dimension_semantics<parallel>], iteration_bounds = array<i64: 2>, scalar_prefetch = 0 : i64, scratch_operands = 0 : i64, tpu.core_type = #tpu.core_type<tc>, window_params = [{transform_indices = @transform_0, window_bounds = array<i64: 1, 4, 256>}, {pipeline_mode = #tpu.pipeline_mode<synchronous>, transform_indices = @transform_1, window_bounds = array<i64: 256, 1024>}, {transform_indices = @transform_2, window_bounds = array<i64: 1, 4, 1024>}]} {
    %c0 = arith.constant 0 : index
    %c0_0 = arith.constant 0 : index
    %c0_1 = arith.constant 0 : index
    %0 = vector.load %arg1[%c0, %c0_0, %c0_1] : memref<1x4x256xf32, #tpu.memory_space<vmem>>, vector<1x4x256xf32>
    %1 = vector.shape_cast %0 : vector<1x4x256xf32> to vector<4x256xf32>
    %c0_2 = arith.constant 0 : index
    %c0_3 = arith.constant 0 : index
    %2 = vector.load %arg2[%c0_2, %c0_3] : memref<256x1024xf32, #tpu.memory_space<vmem>>, vector<256x1024xf32>
    %cst = arith.constant dense<0.000000e+00> : vector<4x1024xf32>
    %3 = tpu.matmul %1, %2, %cst {dimension_numbers = #tpu.dot_dimension_numbers<[1], [0], [0], [1], [0, 0, 1, 1], [], []>} : vector<4x256xf32>, vector<256x1024xf32>, vector<4x1024xf32> -> vector<4x1024xf32>
    %c0_4 = arith.constant 0 : index
    %c0_5 = arith.constant 0 : index
    %c0_6 = arith.constant 0 : index
    %4 = vector.load %arg3[%c0_4, %c0_5, %c0_6] : memref<1x4x1024xf32, #tpu.memory_space<vmem>>, vector<1x4x1024xf32>
    %5 = vector.shape_cast %4 : vector<1x4x1024xf32> to vector<4x1024xf32>
    %6 = vector.shape_cast %3 : vector<4x1024xf32> to vector<1x4x1024xf32>
    tpu.vector_store %arg3[%c0_4, %c0_5, %c0_6], %6 {strides = array<i32>} : memref<1x4x1024xf32, #tpu.memory_space<vmem>>, vector<1x4x1024xf32>,
    return
  }
  func.func @transform_0(%arg0: i32) -> (i32, i32, i32) {
    %c0_i32 = arith.constant 0 : i32
    %c0_i32_0 = arith.constant 0 : i32
    %c0_i32_1 = arith.constant 0 : i32
    return %arg0, %c0_i32, %c0_i32_0 : i32, i32, i32
  }
  func.func @transform_1(%arg0: i32) -> (i32, i32) {
    %c0_i32 = arith.constant 0 : i32
    %c0_i32_0 = arith.constant 0 : i32
    %c0_i32_1 = arith.constant 0 : i32
    return %c0_i32, %c0_i32_0 : i32, i32
  }
  func.func @transform_2(%arg0: i32) -> (i32, i32, i32) {
    %c0_i32 = arith.constant 0 : i32
    %c0_i32_0 = arith.constant 0 : i32
    %c0_i32_1 = arith.constant 0 : i32
    return %arg0, %c0_i32, %c0_i32_0 : i32, i32, i32
  }
}

</mosaic_0001>

<bundles_post_ra>
// kernel: upsampling_bilinear2d.1
= control target key start
LH: loop header
LB: loop body
LE: loop exit
PB: predicated region body
PF: predicated region fallthrough
CT: control target
= control target key end

     0   :  { %s1064_s9 = smov 0   ;;  %s1877_s0 = inlined_call_operand.vmem [shape: f32[2,4,256], index: 0, kind: input, shape index: {}]   ;;  %s1878_s1 = inlined_call_operand.vmem [shape: f32[256,1024], index: 1, kind: input, shape index: {}]   ;;  %s1879_s2 = inlined_call_operand.vmem [shape: f32[2,4,1024], index: 2, kind: output, shape index: {}]  }
   0x1 LB: > { %s763_s10 = sadd.s32 4294967295, %s1047_s9   ;;  %p767_p0 = scmp.ge.s32.totalorder %s1047_s9, 1  ;;  %s1047_s9 = sphi %s1064_s9, %s12_s9  }
   0x2   : > { %p112_p1 = scmp.lt.s32.totalorder %s1047_s9, 3 }
   0x4   : > { %p113_p2 = pnand %p767_p0, %p112_p1 }
   0x5   : > { %v146_v0 = vld [vmem:[%s1878_s1 + $0x8] sm:$0xff] (!%p113_p2)  ;;  %v148_v2 = vld [vmem:[%s1878_s1 + $0x18] sm:$0xff] (!%p113_p2)  ;;  %v145_v5 = vld [vmem:[%s1878_s1] sm:$0xff] (!%p113_p2)  ;;  %p1278_p3 = scmp.lt.s32.totalorder (!%p113_p2), %s763_s10, 1 }
   0x6   : > { %116 = sbr.rel (%p113_p2) target bundleno = 354 (0x162), region = 28  ;;  %v154_v1 = vld [vmem:[%s1878_s1 + $0x48] sm:$0xff] (!%p113_p2)  ;;  %v156_v4 = vld [vmem:[%s1878_s1 + $0x58] sm:$0xff] (!%p113_p2)  ;;  %v153_v6 = vld [vmem:[%s1878_s1 + $0x40] sm:$0xff] (!%p113_p2) }
   0x7   : > { %v776_v3 = vpack.c.bf16 (!%p113_p2), %v154_v1, %v146_v0  ;;  %v840_v7 = vpack.c.bf16 (!%p113_p2), %v156_v4, %v148_v2  ;;  %v778_v8 = vpack.c.bf16 (!%p113_p2), %v153_v6, %v145_v5  ;;  %v147_v9 = vld [vmem:[%s1878_s1 + $0x10] sm:$0xff] (!%p113_p2)  ;;  %v162_v11 = vld [vmem:[%s1878_s1 + $0x88] sm:$0xff] (!%p113_p2)  ;;  %v164_v14 = vld [vmem:[%s1878_s1 + $0x98] sm:$0xff] (!%p113_p2) }
   0x8   : > { %v155_v10 = vld [vmem:[%s1878_s1 + $0x50] sm:$0xff] (!%p113_p2)  ;;  %v170_v13 = vld [vmem:[%s1878_s1 + $0xc8] sm:$0xff] (!%p113_p2)  ;;  %v172_v15 = vld [vmem:[%s1878_s1 + $0xd8] sm:$0xff] (!%p113_p2) }
   0x9   : > { %777 = vmatprep.subr.bf16.mxu0 (!%p113_p2), %v776_v3  ;;  %v842_v12 = vpack.c.bf16 (!%p113_p2), %v155_v10, %v147_v9  ;;  %841 = vmatprep.subr.bf16.mxu1 (!%p113_p2), %v840_v7  ;;  %v780_v16 = vpack.c.bf16 (!%p113_p2), %v170_v13, %v162_v11  ;;  %v844_v17 = vpack.c.bf16 (!%p113_p2), %v172_v15, %v164_v14  ;;  %v161_v18 = vld [vmem:[%s1878_s1 + $0x80] sm:$0xff] (!%p113_p2)  ;;  %v163_v20 = vld [vmem:[%s1878_s1 + $0x90] sm:$0xff] (!%p113_p2)  ;;  %v178_v23 = vld [vmem:[%s1878_s1 + $0x108] sm:$0xff] (!%p113_p2) }
   0xa   : > { %779 = vmatpush1.bf16.msra.mxu0 (!%p113_p2), %v778_v8  ;;  %v169_v19 = vld [vmem:[%s1878_s1 + $0xc0] sm:$0xff] (!%p113_p2)  ;;  %v171_v22 = vld [vmem:[%s1878_s1 + $0xd0] sm:$0xff] (!%p113_p2)  ;;  %v186_v24 = vld [vmem:[%s1878_s1 + $0x148] sm:$0xff] (!%p113_p2) }
   0xb   : > { %843 = vmatpush1.bf16.msra.mxu1 (!%p113_p2), %v842_v12  ;;  %v782_v21 = vpack.c.bf16 (!%p113_p2), %v169_v19, %v161_v18  ;;  %781 = vmatprep.subr.bf16.mxu0 (!%p113_p2), %v780_v16  ;;  %v846_v25 = vpack.c.bf16 (!%p113_p2), %v171_v22, %v163_v20  ;;  %v784_v26 = vpack.c.bf16 (!%p113_p2), %v186_v24, %v178_v23  ;;  %v180_v27 = vld [vmem:[%s1878_s1 + $0x118] sm:$0xff] (!%p113_p2)  ;;  %v177_v29 = vld [vmem:[%s1878_s1 + $0x100] sm:$0xff] (!%p113_p2)  ;;  %v179_v32 = vld [vmem:[%s1878_s1 + $0x110] sm:$0xff] (!%p113_p2) }
   0xc   : > { %845 = vmatprep.subr.bf16.mxu1 (!%p113_p2), %v844_v17  ;;  %v188_v28 = vld [vmem:[%s1878_s1 + $0x158] sm:$0xff] (!%p113_p2)  ;;  %v185_v31 = vld [vmem:[%s1878_s1 + $0x140] sm:$0xff] (!%p113_p2)  ;;  %v187_v33 = vld [vmem:[%s1878_s1 + $0x150] sm:$0xff] (!%p113_p2) }
   0xd   : > { %v848_v30 = vpack.c.bf16 %v188_v28, %v180_v27  ;;  %v786_v34 = vpack.c.bf16 %v185_v31, %v177_v29  ;;  %v194_v35 = vld [vmem:[%s1878_s1 + $0x188] sm:$0xff]  ;;  %v196_v37 = vld [vmem:[%s1878_s1 + $0x198] sm:$0xff]  ;;  %v850_v38 = vpack.c.bf16 %v187_v33, %v179_v32  ;;  %v193_v41 = vld [vmem:[%s1878_s1 + $0x180] sm:$0xff]  ;;  %s1882_s10 = smov (!%p1278_p3, %s763_s10), 1 }
   0xe   : > { %783 = vmatpush1.bf16.msra.mxu0 %v782_v21  ;;  %v202_v36 = vld [vmem:[%s1878_s1 + $0x1c8] sm:$0xff]  ;;  %v204_v40 = vld [vmem:[%s1878_s1 + $0x1d8] sm:$0xff]  ;;  %v201_v42 = vld [vmem:[%s1878_s1 + $0x1c0] sm:$0xff]  ;;  %s774_s24 = sshll.u32 %s1882_s10, 3  ;;  %s775_s6 = sshll.u32 %s1882_s10, 5 }
   0xf   : > { %847 = vmatpush1.bf16.msra.mxu1 %v846_v25  ;;  %785 = vmatprep.subr.bf16.mxu0 %v784_v26  ;;  %v788_v39 = vpack.c.bf16 %v202_v36, %v194_v35  ;;  %v852_v43 = vpack.c.bf16 %v204_v40, %v196_v37  ;;  %v195_v44 = vld [vmem:[%s1878_s1 + $0x190] sm:$0xff]  ;;  %v210_v46 = vld [vmem:[%s1878_s1 + $0x208] sm:$0xff]  ;;  %v212_v48 = vld [vmem:[%s1878_s1 + $0x218] sm:$0xff]  ;;  %v790_v50 = vpack.c.bf16 %v201_v42, %v193_v41  ;;  %s138_s17 = scalar_lea.vmem %s1877_s0, %s774_s24  ;;  %s143_s11 = scalar_lea.vmem %s1879_s2, %s775_s6 }
  0x10   : > { %849 = vmatprep.subr.bf16.mxu1 %v848_v30  ;;  %v203_v45 = vld [vmem:[%s1878_s1 + $0x1d0] sm:$0xff]  ;;  %v218_v47 = vld [vmem:[%s1878_s1 + $0x248] sm:$0xff]  ;;  %v220_v49 = vld [vmem:[%s1878_s1 + $0x258] sm:$0xff] }
  0x11   : > { %v854_v51 = vpack.c.bf16 %v203_v45, %v195_v44  ;;  %v792_v52 = vpack.c.bf16 %v218_v47, %v210_v46  ;;  %v209_v53 = vld [vmem:[%s1878_s1 + $0x200] sm:$0xff]  ;;  %v211_v55 = vld [vmem:[%s1878_s1 + $0x210] sm:$0xff]  ;;  %v856_v56 = vpack.c.bf16 %v220_v49, %v212_v48  ;;  %v226_v58 = vld [vmem:[%s1878_s1 + $0x288] sm:$0xff] }
  0x12   : > { %787 = vmatpush1.bf16.msra.mxu0 %v786_v34  ;;  %v217_v54 = vld [vmem:[%s1878_s1 + $0x240] sm:$0xff]  ;;  %v219_v57 = vld [vmem:[%s1878_s1 + $0x250] sm:$0xff]  ;;  %v234_v59 = vld [vmem:[%s1878_s1 + $0x2c8] sm:$0xff] }
  0x13   : > { %851 = vmatpush1.bf16.msra.mxu1 %v850_v38  ;;  %789 = vmatprep.subr.bf16.mxu0 %v788_v39  ;;  %v228_v60 = vld [vmem:[%s1878_s1 + $0x298] sm:$0xff]  ;;  %v794_v62 = vpack.c.bf16 %v217_v54, %v209_v53  ;;  %v858_v63 = vpack.c.bf16 %v219_v57, %v211_v55  ;;  %v796_v0 = vpack.c.bf16 %v234_v59, %v226_v58  ;;  %v225_v1 = vld [vmem:[%s1878_s1 + $0x280] sm:$0xff]  ;;  %v227_v3 = vld [vmem:[%s1878_s1 + $0x290] sm:$0xff] }
  0x14   : > { %853 = vmatprep.subr.bf16.mxu1 %v852_v43  ;;  %v236_v61 = vld [vmem:[%s1878_s1 + $0x2d8] sm:$0xff]  ;;  %v233_v2 = vld [vmem:[%s1878_s1 + $0x2c0] sm:$0xff]  ;;  %v235_v5 = vld [vmem:[%s1878_s1 + $0x2d0] sm:$0xff] }
  0x15   : > { %v860_v4 = vpack.c.bf16 %v236_v61, %v228_v60  ;;  %v242_v6 = vld [vmem:[%s1878_s1 + $0x308] sm:$0xff]  ;;  %v244_v8 = vld [vmem:[%s1878_s1 + $0x318] sm:$0xff]  ;;  %v798_v10 = vpack.c.bf16 %v233_v2, %v225_v1  ;;  %v862_v11 = vpack.c.bf16 %v235_v5, %v227_v3  ;;  %v241_v13 = vld [vmem:[%s1878_s1 + $0x300] sm:$0xff] }
  0x16   : > { %791 = vmatpush1.bf16.msra.mxu0 %v790_v50  ;;  %v250_v7 = vld [vmem:[%s1878_s1 + $0x348] sm:$0xff]  ;;  %v252_v9 = vld [vmem:[%s1878_s1 + $0x358] sm:$0xff]  ;;  %v249_v14 = vld [vmem:[%s1878_s1 + $0x340] sm:$0xff] }
  0x17   : > { %855 = vmatpush1.bf16.msra.mxu1 %v854_v51  ;;  %793 = vmatprep.subr.bf16.mxu0 %v792_v52  ;;  %v800_v12 = vpack.c.bf16 %v250_v7, %v242_v6  ;;  %v243_v15 = vld [vmem:[%s1878_s1 + $0x310] sm:$0xff]  ;;  %v864_v16 = vpack.c.bf16 %v252_v9, %v244_v8  ;;  %v258_v18 = vld [vmem:[%s1878_s1 + $0x388] sm:$0xff]  ;;  %v260_v20 = vld [vmem:[%s1878_s1 + $0x398] sm:$0xff]  ;;  %v802_v22 = vpack.c.bf16 %v249_v14, %v241_v13 }
  0x18   : > { %857 = vmatprep.subr.bf16.mxu1 %v856_v56  ;;  %v251_v17 = vld [vmem:[%s1878_s1 + $0x350] sm:$0xff]  ;;  %v266_v19 = vld [vmem:[%s1878_s1 + $0x3c8] sm:$0xff]  ;;  %v268_v21 = vld [vmem:[%s1878_s1 + $0x3d8] sm:$0xff] }
  0x19   : > { %v866_v23 = vpack.c.bf16 %v251_v17, %v243_v15  ;;  %v804_v24 = vpack.c.bf16 %v266_v19, %v258_v18  ;;  %v257_v25 = vld [vmem:[%s1878_s1 + $0x380] sm:$0xff]  ;;  %v259_v27 = vld [vmem:[%s1878_s1 + $0x390] sm:$0xff]  ;;  %v868_v28 = vpack.c.bf16 %v268_v21, %v260_v20  ;;  %v274_v30 = vld [vmem:[%s1878_s1 + $0x408] sm:$0xff] }
  0x1a   : > { %795 = vmatpush1.bf16.msra.mxu0 %v794_v62  ;;  %v265_v26 = vld [vmem:[%s1878_s1 + $0x3c0] sm:$0xff]  ;;  %v267_v29 = vld [vmem:[%s1878_s1 + $0x3d0] sm:$0xff]  ;;  %v282_v31 = vld [vmem:[%s1878_s1 + $0x448] sm:$0xff] }
  0x1b   : > { %859 = vmatpush1.bf16.msra.mxu1 %v858_v63  ;;  %797 = vmatprep.subr.bf16.mxu0 %v796_v0  ;;  %v276_v32 = vld [vmem:[%s1878_s1 + $0x418] sm:$0xff]  ;;  %v806_v34 = vpack.c.bf16 %v265_v26, %v257_v25  ;;  %v870_v35 = vpack.c.bf16 %v267_v29, %v259_v27  ;;  %v808_v36 = vpack.c.bf16 %v282_v31, %v274_v30  ;;  %v273_v37 = vld [vmem:[%s1878_s1 + $0x400] sm:$0xff]  ;;  %v275_v39 = vld [vmem:[%s1878_s1 + $0x410] sm:$0xff] }
  0x1c   : > { %861 = vmatprep.subr.bf16.mxu1 %v860_v4  ;;  %v284_v33 = vld [vmem:[%s1878_s1 + $0x458] sm:$0xff]  ;;  %v281_v38 = vld [vmem:[%s1878_s1 + $0x440] sm:$0xff]  ;;  %v283_v41 = vld [vmem:[%s1878_s1 + $0x450] sm:$0xff] }
  0x1d   : > { %v872_v40 = vpack.c.bf16 %v284_v33, %v276_v32  ;;  %v290_v42 = vld [vmem:[%s1878_s1 + $0x488] sm:$0xff]  ;;  %v292_v44 = vld [vmem:[%s1878_s1 + $0x498] sm:$0xff]  ;;  %v810_v46 = vpack.c.bf16 %v281_v38, %v273_v37  ;;  %v874_v47 = vpack.c.bf16 %v283_v41, %v275_v39  ;;  %v289_v49 = vld [vmem:[%s1878_s1 + $0x480] sm:$0xff] }
  0x1e   : > { %799 = vmatpush1.bf16.msra.mxu0 %v798_v10  ;;  %v298_v43 = vld [vmem:[%s1878_s1 + $0x4c8] sm:$0xff]  ;;  %v300_v45 = vld [vmem:[%s1878_s1 + $0x4d8] sm:$0xff]  ;;  %v297_v50 = vld [vmem:[%s1878_s1 + $0x4c0] sm:$0xff] }
  0x1f   : > { %863 = vmatpush1.bf16.msra.mxu1 %v862_v11  ;;  %801 = vmatprep.subr.bf16.mxu0 %v800_v12  ;;  %v812_v48 = vpack.c.bf16 %v298_v43, %v290_v42  ;;  %v291_v51 = vld [vmem:[%s1878_s1 + $0x490] sm:$0xff]  ;;  %v876_v52 = vpack.c.bf16 %v300_v45, %v292_v44  ;;  %v306_v54 = vld [vmem:[%s1878_s1 + $0x508] sm:$0xff]  ;;  %v308_v56 = vld [vmem:[%s1878_s1 + $0x518] sm:$0xff]  ;;  %v814_v58 = vpack.c.bf16 %v297_v50, %v289_v49 }
  0x20   : > { %865 = vmatprep.subr.bf16.mxu1 %v864_v16  ;;  %v299_v53 = vld [vmem:[%s1878_s1 + $0x4d0] sm:$0xff]  ;;  %v314_v55 = vld [vmem:[%s1878_s1 + $0x548] sm:$0xff]  ;;  %v316_v57 = vld [vmem:[%s1878_s1 + $0x558] sm:$0xff] }
  0x21   : > { %v878_v59 = vpack.c.bf16 %v299_v53, %v291_v51  ;;  %v816_v60 = vpack.c.bf16 %v314_v55, %v306_v54  ;;  %v305_v61 = vld [vmem:[%s1878_s1 + $0x500] sm:$0xff]  ;;  %v307_v63 = vld [vmem:[%s1878_s1 + $0x510] sm:$0xff]  ;;  %v880_v0 = vpack.c.bf16 %v316_v57, %v308_v56  ;;  %v322_v2 = vld [vmem:[%s1878_s1 + $0x588] sm:$0xff] }
  0x22   : > { %803 = vmatpush1.bf16.msra.mxu0 %v802_v22  ;;  %v313_v62 = vld [vmem:[%s1878_s1 + $0x540] sm:$0xff]  ;;  %v315_v1 = vld [vmem:[%s1878_s1 + $0x550] sm:$0xff]  ;;  %v330_v3 = vld [vmem:[%s1878_s1 + $0x5c8] sm:$0xff] }
  0x23   : > { %867 = vmatpush1.bf16.msra.mxu1 %v866_v23  ;;  %805 = vmatprep.subr.bf16.mxu0 %v804_v24  ;;  %v324_v4 = vld [vmem:[%s1878_s1 + $0x598] sm:$0xff]  ;;  %v818_v6 = vpack.c.bf16 %v313_v62, %v305_v61  ;;  %v321_v7 = vld [vmem:[%s1878_s1 + $0x580] sm:$0xff]  ;;  %v882_v8 = vpack.c.bf16 %v315_v1, %v307_v63  ;;  %v820_v9 = vpack.c.bf16 %v330_v3, %v322_v2  ;;  %v323_v11 = vld [vmem:[%s1878_s1 + $0x590] sm:$0xff] }
  0x24   : > { %869 = vmatprep.subr.bf16.mxu1 %v868_v28  ;;  %v332_v5 = vld [vmem:[%s1878_s1 + $0x5d8] sm:$0xff]  ;;  %v329_v10 = vld [vmem:[%s1878_s1 + $0x5c0] sm:$0xff]  ;;  %v331_v12 = vld [vmem:[%s1878_s1 + $0x5d0] sm:$0xff] }
  0x25   : > { %v884_v13 = vpack.c.bf16 %v332_v5, %v324_v4  ;;  %v338_v14 = vld [vmem:[%s1878_s1 + $0x608] sm:$0xff]  ;;  %v1382_v16 = vld [vmem:[%s138_s17] sm:$0xff]  ;;  %v340_v17 = vld [vmem:[%s1878_s1 + $0x618] sm:$0xff]  ;;  %v822_v20 = vpack.c.bf16 %v329_v10, %v321_v7  ;;  %v886_v21 = vpack.c.bf16 %v331_v12, %v323_v11 }
  0x26   : > { %807 = vmatpush1.bf16.msra.mxu0 %v806_v34  ;;  %v346_v15 = vld [vmem:[%s1878_s1 + $0x648] sm:$0xff]  ;;  %v348_v18 = vld [vmem:[%s1878_s1 + $0x658] sm:$0xff]  ;;  %v1392_v19 = vcombine.high %v1382_v16, %v1382_v16  ;;  %v337_v23 = vld [vmem:[%s1878_s1 + $0x600] sm:$0xff] }
  0x27   : > { %871 = vmatpush1.bf16.msra.mxu1 %v870_v35  ;;  %809 = vmatprep.subr.bf16.mxu0 %v808_v36  ;;  %v824_v22 = vpack.c.bf16 %v346_v15, %v338_v14  ;;  %v345_v24 = vld [vmem:[%s1878_s1 + $0x640] sm:$0xff]  ;;  %v339_v25 = vld [vmem:[%s1878_s1 + $0x610] sm:$0xff]  ;;  %v888_v26 = vpack.c.bf16 %v348_v18, %v340_v17  ;;  %v354_v28 = vld [vmem:[%s1878_s1 + $0x688] sm:$0xff] }
  0x28   : > { %873 = vmatprep.subr.bf16.mxu1 %v872_v40  ;;  %v347_v27 = vld [vmem:[%s1878_s1 + $0x650] sm:$0xff]  ;;  %v362_v29 = vld [vmem:[%s1878_s1 + $0x6c8] sm:$0xff]  ;;  %468 = vmatprep.mubr.f32.mxu0 %v1392_v19  ;;  %v356_v30 = vld [vmem:[%s1878_s1 + $0x698] sm:$0xff]  ;;  %v826_v32 = vpack.c.bf16 %v345_v24, %v337_v23 }
  0x29   : > { %v364_v31 = vld [vmem:[%s1878_s1 + $0x6d8] sm:$0xff]  ;;  %539 = vmatprep.mubr.f32.mxu1 %v1392_v19  ;;  %v890_v33 = vpack.c.bf16 %v347_v27, %v339_v25  ;;  %v828_v34 = vpack.c.bf16 %v362_v29, %v354_v28  ;;  %v353_v35 = vld [vmem:[%s1878_s1 + $0x680] sm:$0xff]  ;;  %v355_v37 = vld [vmem:[%s1878_s1 + $0x690] sm:$0xff] }
  0x2a   : > { %811 = vmatpush1.bf16.msra.mxu0 %v810_v46  ;;  %v361_v36 = vld [vmem:[%s1878_s1 + $0x6c0] sm:$0xff]  ;;  %v892_v38 = vpack.c.bf16 %v364_v31, %v356_v30  ;;  %v363_v39 = vld [vmem:[%s1878_s1 + $0x6d0] sm:$0xff]  ;;  %v370_v40 = vld [vmem:[%s1878_s1 + $0x708] sm:$0xff] }
  0x2b   : > { %875 = vmatpush1.bf16.msra.mxu1 %v874_v47  ;;  %813 = vmatprep.subr.bf16.mxu0 %v812_v48  ;;  %v378_v41 = vld [vmem:[%s1878_s1 + $0x748] sm:$0xff]  ;;  %v372_v42 = vld [vmem:[%s1878_s1 + $0x718] sm:$0xff]  ;;  %v830_v44 = vpack.c.bf16 %v361_v36, %v353_v35  ;;  %v894_v45 = vpack.c.bf16 %v363_v39, %v355_v37  ;;  %v369_v47 = vld [vmem:[%s1878_s1 + $0x700] sm:$0xff] }
  0x2c   : > { %877 = vmatprep.subr.bf16.mxu1 %v876_v52  ;;  %v380_v43 = vld [vmem:[%s1878_s1 + $0x758] sm:$0xff]  ;;  %v832_v46 = vpack.c.bf16 %v378_v41, %v370_v40  ;;  %v377_v48 = vld [vmem:[%s1878_s1 + $0x740] sm:$0xff]  ;;  %v371_v49 = vld [vmem:[%s1878_s1 + $0x710] sm:$0xff] }
  0x2d   : > { %v896_v50 = vpack.c.bf16 %v380_v43, %v372_v42  ;;  %v379_v51 = vld [vmem:[%s1878_s1 + $0x750] sm:$0xff]  ;;  %v386_v52 = vld [vmem:[%s1878_s1 + $0x788] sm:$0xff]  ;;  %v388_v54 = vld [vmem:[%s1878_s1 + $0x798] sm:$0xff]  ;;  %v834_v56 = vpack.c.bf16 %v377_v48, %v369_v47 }
  0x2e   : > { %815 = vmatpush1.bf16.msra.mxu0 %v814_v58  ;;  %v394_v53 = vld [vmem:[%s1878_s1 + $0x7c8] sm:$0xff]  ;;  %v396_v55 = vld [vmem:[%s1878_s1 + $0x7d8] sm:$0xff]  ;;  %v898_v57 = vpack.c.bf16 %v379_v51, %v371_v49  ;;  %v387_v61 = vld [vmem:[%s1878_s1 + $0x790] sm:$0xff] }
  0x2f   : > { %879 = vmatpush1.bf16.msra.mxu1 %v878_v59  ;;  %817 = vmatprep.subr.bf16.mxu0 %v816_v60  ;;  %v836_v58 = vpack.c.bf16 %v394_v53, %v386_v52  ;;  %v385_v59 = vld [vmem:[%s1878_s1 + $0x780] sm:$0xff]  ;;  %v900_v62 = vpack.c.bf16 %v396_v55, %v388_v54  ;;  %v395_v63 = vld [vmem:[%s1878_s1 + $0x7d0] sm:$0xff]  ;;  %v158_v1 = vld [vmem:[%s1878_s1 + $0x68] sm:$0xff] }
  0x30   : > { %881 = vmatprep.subr.bf16.mxu1 %v880_v0  ;;  %v393_v60 = vld [vmem:[%s1878_s1 + $0x7c0] sm:$0xff]  ;;  %v150_v0 = vld [vmem:[%s1878_s1 + $0x28] sm:$0xff]  ;;  %v152_v2 = vld [vmem:[%s1878_s1 + $0x38] sm:$0xff]  ;;  %v902_v5 = vpack.c.bf16 %v395_v63, %v387_v61 }
  0x31   : > { %v160_v3 = vld [vmem:[%s1878_s1 + $0x78] sm:$0xff]  ;;  %v838_v4 = vpack.c.bf16 %v393_v60, %v385_v59  ;;  %v149_v7 = vld [vmem:[%s1878_s1 + $0x20] sm:$0xff]  ;;  %v159_v11 = vld [vmem:[%s1878_s1 + $0x70] sm:$0xff] }
  0x32   : > { %819 = vmatpush1.bf16.msra.mxu0 %v818_v6  ;;  %v904_v6 = vpack.c.bf16 %v158_v1, %v150_v0  ;;  %v968_v10 = vpack.c.bf16 %v160_v3, %v152_v2  ;;  %v166_v12 = vld [vmem:[%s1878_s1 + $0xa8] sm:$0xff]  ;;  %v168_v14 = vld [vmem:[%s1878_s1 + $0xb8] sm:$0xff]  ;;  %v167_v23 = vld [vmem:[%s1878_s1 + $0xb0] sm:$0xff] }
  0x33   : > { %883 = vmatpush1.bf16.msra.mxu1 %v882_v8  ;;  %821 = vmatprep.subr.bf16.mxu0 %v820_v9  ;;  %v157_v8 = vld [vmem:[%s1878_s1 + $0x60] sm:$0xff]  ;;  %v151_v9 = vld [vmem:[%s1878_s1 + $0x30] sm:$0xff]  ;;  %v176_v15 = vld [vmem:[%s1878_s1 + $0xf8] sm:$0xff] }
  0x34   : > { %885 = vmatprep.subr.bf16.mxu1 %v884_v13  ;;  %v174_v13 = vld [vmem:[%s1878_s1 + $0xe8] sm:$0xff]  ;;  %v906_v17 = vpack.c.bf16 %v157_v8, %v149_v7  ;;  %v970_v18 = vpack.c.bf16 %v159_v11, %v151_v9  ;;  %v972_v24 = vpack.c.bf16 %v176_v15, %v168_v14  ;;  %v175_v25 = vld [vmem:[%s1878_s1 + $0xf0] sm:$0xff]  ;;  %v184_v28 = vld [vmem:[%s1878_s1 + $0x138] sm:$0xff] }
  0x35   : > { %v190_v27 = vld [vmem:[%s1878_s1 + $0x168] sm:$0xff]  ;;  %v192_v29 = vld [vmem:[%s1878_s1 + $0x178] sm:$0xff]  ;;  %v974_v31 = vpack.c.bf16 %v175_v25, %v167_v23  ;;  %v183_v35 = vld [vmem:[%s1878_s1 + $0x130] sm:$0xff] }
  0x36   : > { %823 = vmatpush1.bf16.msra.mxu0 %v822_v20  ;;  %v908_v20 = vpack.c.bf16 %v174_v13, %v166_v12  ;;  %v976_v36 = vpack.c.bf16 %v192_v29, %v184_v28  ;;  %v191_v37 = vld [vmem:[%s1878_s1 + $0x170] sm:$0xff]  ;;  %v206_v39 = vld [vmem:[%s1878_s1 + $0x1e8] sm:$0xff]  ;;  %v200_v40 = vld [vmem:[%s1878_s1 + $0x1b8] sm:$0xff] }
  0x37   : > { %887 = vmatpush1.bf16.msra.mxu1 %v886_v21  ;;  %825 = vmatprep.subr.bf16.mxu0 %v824_v22  ;;  %v165_v21 = vld [vmem:[%s1878_s1 + $0xa0] sm:$0xff]  ;;  %v208_v41 = vld [vmem:[%s1878_s1 + $0x1f8] sm:$0xff]  ;;  %v978_v43 = vpack.c.bf16 %v191_v37, %v183_v35  ;;  %v199_v47 = vld [vmem:[%s1878_s1 + $0x1b0] sm:$0xff] }
  0x38   : > { %889 = vmatprep.subr.bf16.mxu1 %v888_v26  ;;  %v173_v22 = vld [vmem:[%s1878_s1 + $0xe0] sm:$0xff]  ;;  %v182_v26 = vld [vmem:[%s1878_s1 + $0x128] sm:$0xff]  ;;  %v207_v48 = vld [vmem:[%s1878_s1 + $0x1f0] sm:$0xff] }
  0x39   : > { %v910_v30 = vpack.c.bf16 %v173_v22, %v165_v21  ;;  %v214_v49 = vld [vmem:[%s1878_s1 + $0x228] sm:$0xff]  ;;  %v216_v51 = vld [vmem:[%s1878_s1 + $0x238] sm:$0xff]  ;;  %v982_v54 = vpack.c.bf16 %v207_v48, %v199_v47  ;;  %v223_v60 = vld [vmem:[%s1878_s1 + $0x270] sm:$0xff] }
  0x3a   : > { %827 = vmatpush1.bf16.msra.mxu0 %v826_v32  ;;  %v912_v32 = vpack.c.bf16 %v190_v27, %v182_v26  ;;  %v224_v52 = vld [vmem:[%s1878_s1 + $0x278] sm:$0xff]  ;;  %v230_v61 = vld [vmem:[%s1878_s1 + $0x2a8] sm:$0xff]  ;;  %v239_v8 = vld [vmem:[%s1878_s1 + $0x2f0] sm:$0xff] }
  0x3b   : > { %891 = vmatpush1.bf16.msra.mxu1 %v890_v33  ;;  %829 = vmatprep.subr.bf16.mxu0 %v828_v34  ;;  %v181_v33 = vld [vmem:[%s1878_s1 + $0x120] sm:$0xff]  ;;  %v984_v59 = vpack.c.bf16 %v224_v52, %v216_v51  ;;  %v232_v63 = vld [vmem:[%s1878_s1 + $0x2b8] sm:$0xff]  ;;  %v246_v9 = vld [vmem:[%s1878_s1 + $0x328] sm:$0xff] }
  0x3c   : > { %893 = vmatprep.subr.bf16.mxu1 %v892_v38  ;;  %v189_v34 = vld [vmem:[%s1878_s1 + $0x160] sm:$0xff]  ;;  %v198_v38 = vld [vmem:[%s1878_s1 + $0x1a8] sm:$0xff]  ;;  %v240_v0 = vld [vmem:[%s1878_s1 + $0x2f8] sm:$0xff] }
  0x3d   : > { %v914_v42 = vpack.c.bf16 %v189_v34, %v181_v33  ;;  %v988_v7 = vpack.c.bf16 %v240_v0, %v232_v63  ;;  %v248_v11 = vld [vmem:[%s1878_s1 + $0x338] sm:$0xff]  ;;  %v255_v22 = vld [vmem:[%s1878_s1 + $0x370] sm:$0xff]  ;;  %v262_v23 = vld [vmem:[%s1878_s1 + $0x3a8] sm:$0xff] }
  0x3e   : > { %831 = vmatpush1.bf16.msra.mxu0 %v830_v44  ;;  %v916_v44 = vpack.c.bf16 %v206_v39, %v198_v38  ;;  %v256_v12 = vld [vmem:[%s1878_s1 + $0x378] sm:$0xff]  ;;  %v271_v34 = vld [vmem:[%s1878_s1 + $0x3f0] sm:$0xff]  ;;  %v278_v35 = vld [vmem:[%s1878_s1 + $0x428] sm:$0xff] }
  0x3f   : > { %895 = vmatpush1.bf16.msra.mxu1 %v894_v45  ;;  %833 = vmatprep.subr.bf16.mxu0 %v832_v46  ;;  %v197_v45 = vld [vmem:[%s1878_s1 + $0x1a0] sm:$0xff]  ;;  %v992_v21 = vpack.c.bf16 %v256_v12, %v248_v11  ;;  %v264_v25 = vld [vmem:[%s1878_s1 + $0x3b8] sm:$0xff]  ;;  %v294_v47 = vld [vmem:[%s1878_s1 + $0x4a8] sm:$0xff] }
  0x40   : > { %897 = vmatprep.subr.bf16.mxu1 %v896_v50  ;;  %v205_v46 = vld [vmem:[%s1878_s1 + $0x1e0] sm:$0xff]  ;;  %v222_v50 = vld [vmem:[%s1878_s1 + $0x268] sm:$0xff]  ;;  %v272_v26 = vld [vmem:[%s1878_s1 + $0x3f8] sm:$0xff] }
  0x41   : > { %v918_v53 = vpack.c.bf16 %v205_v46, %v197_v45  ;;  %v920_v55 = vpack.c.bf16 %v222_v50, %v214_v49  ;;  %v996_v33 = vpack.c.bf16 %v272_v26, %v264_v25  ;;  %v280_v37 = vld [vmem:[%s1878_s1 + $0x438] sm:$0xff]  ;;  %v287_v46 = vld [vmem:[%s1878_s1 + $0x470] sm:$0xff] }
  0x42   : > { %835 = vmatpush1.bf16.msra.mxu0 %v834_v56  ;;  %v213_v56 = vld [vmem:[%s1878_s1 + $0x220] sm:$0xff]  ;;  %v288_v38 = vld [vmem:[%s1878_s1 + $0x478] sm:$0xff] }
  0x43   : > { %899 = vmatpush1.bf16.msra.mxu1 %v898_v57  ;;  %837 = vmatprep.subr.bf16.mxu0 %v836_v58  ;;  %v221_v57 = vld [vmem:[%s1878_s1 + $0x260] sm:$0xff]  ;;  %v215_v58 = vld [vmem:[%s1878_s1 + $0x230] sm:$0xff]  ;;  %v1000_v45 = vpack.c.bf16 %v288_v38, %v280_v37  ;;  %v296_v48 = vld [vmem:[%s1878_s1 + $0x4b8] sm:$0xff] }
  0x44   : > { %901 = vmatprep.subr.bf16.mxu1 %v900_v62  ;;  %v238_v62 = vld [vmem:[%s1878_s1 + $0x2e8] sm:$0xff]  ;;  %v922_v1 = vpack.c.bf16 %v221_v57, %v213_v56  ;;  %v986_v2 = vpack.c.bf16 %v223_v60, %v215_v58  ;;  %v304_v49 = vld [vmem:[%s1878_s1 + $0x4f8] sm:$0xff]  ;;  %v303_v57 = vld [vmem:[%s1878_s1 + $0x4f0] sm:$0xff] }
  0x45   : > { %v924_v3 = vpack.c.bf16 %v238_v62, %v230_v61  ;;  %v1004_v56 = vpack.c.bf16 %v304_v49, %v296_v48  ;;  %v310_v58 = vld [vmem:[%s1878_s1 + $0x528] sm:$0xff]  ;;  %v312_v60 = vld [vmem:[%s1878_s1 + $0x538] sm:$0xff] }
  0x46   : > { %839 = vmatpush1.bf16.msra.mxu0 %v838_v4  ;;  %v229_v4 = vld [vmem:[%s1878_s1 + $0x2a0] sm:$0xff]  ;;  %v320_v61 = vld [vmem:[%s1878_s1 + $0x578] sm:$0xff] }
  0x47   : > { %903 = vmatpush1.bf16.msra.mxu1 %v902_v5  ;;  %905 = vmatprep.subr.bf16.mxu0 %v904_v6  ;;  %v237_v5 = vld [vmem:[%s1878_s1 + $0x2e0] sm:$0xff]  ;;  %v231_v6 = vld [vmem:[%s1878_s1 + $0x2b0] sm:$0xff] }
  0x48   : > { %969 = vmatprep.subr.bf16.mxu1 %v968_v10  ;;  %v254_v10 = vld [vmem:[%s1878_s1 + $0x368] sm:$0xff]  ;;  %v926_v13 = vpack.c.bf16 %v237_v5, %v229_v4  ;;  %v990_v14 = vpack.c.bf16 %v239_v8, %v231_v6  ;;  %v1008_v4 = vpack.c.bf16 %v320_v61, %v312_v60  ;;  %v319_v5 = vld [vmem:[%s1878_s1 + $0x570] sm:$0xff]  ;;  %v328_v8 = vld [vmem:[%s1878_s1 + $0x5b8] sm:$0xff] }
  0x49   : > { %469 = vmatmul.mubr.f32.vlgmr.msra.gmra.mrb[0].mxu0 %v1382_v16  ;;  %v928_v15 = vpack.c.bf16 %v254_v10, %v246_v9  ;;  %v326_v6 = vld [vmem:[%s1878_s1 + $0x5a8] sm:$0xff]  ;;  %v336_v9 = vld [vmem:[%s1878_s1 + $0x5f8] sm:$0xff] }
  0x4a   : > { %540 = vmatmul.mubr.f32.vlgmr.msra.gmra.mrb[0].mxu1 %v1382_v16  ;;  %907 = vmatpush1.bf16.msra.mxu0 %v906_v17  ;;  %v245_v17 = vld [vmem:[%s1878_s1 + $0x320] sm:$0xff] }
  0x4b   : > { %971 = vmatpush1.bf16.msra.mxu1 %v970_v18  ;;  %909 = vmatprep.subr.bf16.mxu0 %v908_v20  ;;  %v253_v18 = vld [vmem:[%s1878_s1 + $0x360] sm:$0xff]  ;;  %v247_v20 = vld [vmem:[%s1878_s1 + $0x330] sm:$0xff] }
  0x4c   : > { %973 = vmatprep.subr.bf16.mxu1 %v972_v24  ;;  %610 = vmatprep.mubr.f32.mxu0 %v1392_v19  ;;  %v270_v24 = vld [vmem:[%s1878_s1 + $0x3e8] sm:$0xff]  ;;  %v930_v27 = vpack.c.bf16 %v253_v18, %v245_v17  ;;  %v994_v28 = vpack.c.bf16 %v255_v22, %v247_v20  ;;  %v1012_v17 = vpack.c.bf16 %v336_v9, %v328_v8  ;;  %v335_v18 = vld [vmem:[%s1878_s1 + $0x5f0] sm:$0xff]  ;;  %v344_v22 = vld [vmem:[%s1878_s1 + $0x638] sm:$0xff] }
  0x4d   : > { %681 = vmatprep.mubr.f32.mxu1 %v1392_v19  ;;  %v980_v19 = vpack.c.bf16 %v208_v41, %v200_v40  ;;  %v932_v29 = vpack.c.bf16 %v270_v24, %v262_v23  ;;  %v342_v20 = vld [vmem:[%s1878_s1 + $0x628] sm:$0xff]  ;;  %v352_v23 = vld [vmem:[%s1878_s1 + $0x678] sm:$0xff] }
  0x4e   : > { %911 = vmatpush1.bf16.msra.mxu0 %v910_v30  ;;  %v261_v30 = vld [vmem:[%s1878_s1 + $0x3a0] sm:$0xff] }
  0x4f   : > { %975 = vmatpush1.bf16.msra.mxu1 %v974_v31  ;;  %913 = vmatprep.subr.bf16.mxu0 %v912_v32  ;;  %v269_v31 = vld [vmem:[%s1878_s1 + $0x3e0] sm:$0xff]  ;;  %v263_v32 = vld [vmem:[%s1878_s1 + $0x3b0] sm:$0xff] }
  0x50   : > { %977 = vmatprep.subr.bf16.mxu1 %v976_v36  ;;  %v286_v36 = vld [vmem:[%s1878_s1 + $0x468] sm:$0xff]  ;;  %v934_v39 = vpack.c.bf16 %v269_v31, %v261_v30  ;;  %v998_v40 = vpack.c.bf16 %v271_v34, %v263_v32  ;;  %v1016_v30 = vpack.c.bf16 %v352_v23, %v344_v22  ;;  %v351_v31 = vld [vmem:[%s1878_s1 + $0x670] sm:$0xff]  ;;  %v360_v34 = vld [vmem:[%s1878_s1 + $0x6b8] sm:$0xff] }
  0x51   : > { %v936_v41 = vpack.c.bf16 %v286_v36, %v278_v35  ;;  %v358_v32 = vld [vmem:[%s1878_s1 + $0x6a8] sm:$0xff]  ;;  %v368_v35 = vld [vmem:[%s1878_s1 + $0x6f8] sm:$0xff] }
  0x52   : > { %915 = vmatpush1.bf16.msra.mxu0 %v914_v42  ;;  %v277_v42 = vld [vmem:[%s1878_s1 + $0x420] sm:$0xff] }
  0x53   : > { %979 = vmatpush1.bf16.msra.mxu1 %v978_v43  ;;  %917 = vmatprep.subr.bf16.mxu0 %v916_v44  ;;  %v285_v43 = vld [vmem:[%s1878_s1 + $0x460] sm:$0xff]  ;;  %v279_v44 = vld [vmem:[%s1878_s1 + $0x430] sm:$0xff] }
  0x54   : > { %981 = vmatprep.subr.bf16.mxu1 %v980_v19  ;;  %v302_v19 = vld [vmem:[%s1878_s1 + $0x4e8] sm:$0xff]  ;;  %v938_v50 = vpack.c.bf16 %v285_v43, %v277_v42  ;;  %v1002_v51 = vpack.c.bf16 %v287_v46, %v279_v44  ;;  %v1020_v42 = vpack.c.bf16 %v368_v35, %v360_v34  ;;  %v367_v43 = vld [vmem:[%s1878_s1 + $0x6f0] sm:$0xff]  ;;  %v376_v46 = vld [vmem:[%s1878_s1 + $0x738] sm:$0xff] }
  0x55   : > { %v940_v52 = vpack.c.bf16 %v302_v19, %v294_v47  ;;  %v374_v44 = vld [vmem:[%s1878_s1 + $0x728] sm:$0xff]  ;;  %v384_v47 = vld [vmem:[%s1878_s1 + $0x778] sm:$0xff] }
  0x56   : > { %919 = vmatpush1.bf16.msra.mxu0 %v918_v53  ;;  %v293_v53 = vld [vmem:[%s1878_s1 + $0x4a0] sm:$0xff] }
  0x57   : > { %983 = vmatpush1.bf16.msra.mxu1 %v982_v54  ;;  %921 = vmatprep.subr.bf16.mxu0 %v920_v55  ;;  %v301_v54 = vld [vmem:[%s1878_s1 + $0x4e0] sm:$0xff]  ;;  %v295_v55 = vld [vmem:[%s1878_s1 + $0x4b0] sm:$0xff] }
  0x58   : > { %985 = vmatprep.subr.bf16.mxu1 %v984_v59  ;;  %v318_v59 = vld [vmem:[%s1878_s1 + $0x568] sm:$0xff]  ;;  %v942_v62 = vpack.c.bf16 %v301_v54, %v293_v53  ;;  %v1006_v63 = vpack.c.bf16 %v303_v57, %v295_v55  ;;  %v1024_v53 = vpack.c.bf16 %v384_v47, %v376_v46  ;;  %v383_v54 = vld [vmem:[%s1878_s1 + $0x770] sm:$0xff]  ;;  %v392_v57 = vld [vmem:[%s1878_s1 + $0x7b8] sm:$0xff] }
  0x59   : > { %v944_v0 = vpack.c.bf16 %v318_v59, %v310_v58  ;;  %v390_v55 = vld [vmem:[%s1878_s1 + $0x7a8] sm:$0xff]  ;;  %v400_v58 = vld [vmem:[%s1878_s1 + $0x7f8] sm:$0xff] }
  0x5a   : > { %923 = vmatpush1.bf16.msra.mxu0 %v922_v1  ;;  %v309_v1 = vld [vmem:[%s1878_s1 + $0x520] sm:$0xff] }
  0x5b   : > { %987 = vmatpush1.bf16.msra.mxu1 %v986_v2  ;;  %925 = vmatprep.subr.bf16.mxu0 %v924_v3  ;;  %v317_v2 = vld [vmem:[%s1878_s1 + $0x560] sm:$0xff]  ;;  %v311_v3 = vld [vmem:[%s1878_s1 + $0x530] sm:$0xff] }
  0x5c   : > { %989 = vmatprep.subr.bf16.mxu1 %v988_v7  ;;  %v334_v7 = vld [vmem:[%s1878_s1 + $0x5e8] sm:$0xff]  ;;  %v946_v10 = vpack.c.bf16 %v317_v2, %v309_v1  ;;  %v1010_v11 = vpack.c.bf16 %v319_v5, %v311_v3  ;;  %v391_v1 = vld [vmem:[%s1878_s1 + $0x7b0] sm:$0xff] }
  0x5d   : > { %v948_v12 = vpack.c.bf16 %v334_v7, %v326_v6  ;;  %v399_v2 = vld [vmem:[%s1878_s1 + $0x7f0] sm:$0xff] }
  0x5e   : > { %927 = vmatpush1.bf16.msra.mxu0 %v926_v13  ;;  %v325_v13 = vld [vmem:[%s1878_s1 + $0x5a0] sm:$0xff] }
  0x5f   : > { %991 = vmatpush1.bf16.msra.mxu1 %v990_v14  ;;  %929 = vmatprep.subr.bf16.mxu0 %v928_v15  ;;  %v333_v14 = vld [vmem:[%s1878_s1 + $0x5e0] sm:$0xff]  ;;  %v327_v15 = vld [vmem:[%s1878_s1 + $0x5b0] sm:$0xff] }
  0x60   : > { %993 = vmatprep.subr.bf16.mxu1 %v992_v21  ;;  %v350_v21 = vld [vmem:[%s1878_s1 + $0x668] sm:$0xff]  ;;  %v950_v24 = vpack.c.bf16 %v333_v14, %v325_v13  ;;  %v1014_v25 = vpack.c.bf16 %v335_v18, %v327_v15 }
  0x61   : > { %v952_v26 = vpack.c.bf16 %v350_v21, %v342_v20 }
  0x62   : > { %931 = vmatpush1.bf16.msra.mxu0 %v930_v27  ;;  %v341_v27 = vld [vmem:[%s1878_s1 + $0x620] sm:$0xff] }
  0x63   : > { %995 = vmatpush1.bf16.msra.mxu1 %v994_v28  ;;  %933 = vmatprep.subr.bf16.mxu0 %v932_v29  ;;  %v349_v28 = vld [vmem:[%s1878_s1 + $0x660] sm:$0xff]  ;;  %v343_v29 = vld [vmem:[%s1878_s1 + $0x630] sm:$0xff] }
  0x64   : > { %997 = vmatprep.subr.bf16.mxu1 %v996_v33  ;;  %v366_v33 = vld [vmem:[%s1878_s1 + $0x6e8] sm:$0xff]  ;;  %v954_v36 = vpack.c.bf16 %v349_v28, %v341_v27  ;;  %v1018_v37 = vpack.c.bf16 %v351_v31, %v343_v29 }
  0x65   : > { %v956_v38 = vpack.c.bf16 %v366_v33, %v358_v32 }
  0x66   : > { %935 = vmatpush1.bf16.msra.mxu0 %v934_v39  ;;  %v357_v39 = vld [vmem:[%s1878_s1 + $0x6a0] sm:$0xff] }
  0x67   : > { %999 = vmatpush1.bf16.msra.mxu1 %v998_v40  ;;  %937 = vmatprep.subr.bf16.mxu0 %v936_v41  ;;  %v365_v40 = vld [vmem:[%s1878_s1 + $0x6e0] sm:$0xff]  ;;  %v359_v41 = vld [vmem:[%s1878_s1 + $0x6b0] sm:$0xff] }
  0x68   : > { %1001 = vmatprep.subr.bf16.mxu1 %v1000_v45  ;;  %v382_v45 = vld [vmem:[%s1878_s1 + $0x768] sm:$0xff]  ;;  %v958_v19 = vpack.c.bf16 %v365_v40, %v357_v39  ;;  %v1022_v48 = vpack.c.bf16 %v367_v43, %v359_v41 }
  0x69   : > { %v960_v49 = vpack.c.bf16 %v382_v45, %v374_v44 }
  0x6a   : > { %939 = vmatpush1.bf16.msra.mxu0 %v938_v50  ;;  %v373_v50 = vld [vmem:[%s1878_s1 + $0x720] sm:$0xff] }
  0x6b   : > { %1003 = vmatpush1.bf16.msra.mxu1 %v1002_v51  ;;  %941 = vmatprep.subr.bf16.mxu0 %v940_v52  ;;  %v381_v51 = vld [vmem:[%s1878_s1 + $0x760] sm:$0xff]  ;;  %v375_v52 = vld [vmem:[%s1878_s1 + $0x730] sm:$0xff] }
  0x6c   : > { %1005 = vmatprep.subr.bf16.mxu1 %v1004_v56  ;;  %v398_v56 = vld [vmem:[%s1878_s1 + $0x7e8] sm:$0xff]  ;;  %v962_v59 = vpack.c.bf16 %v381_v51, %v373_v50  ;;  %v1026_v60 = vpack.c.bf16 %v383_v54, %v375_v52 }
  0x6d   : > { %v964_v61 = vpack.c.bf16 %v398_v56, %v390_v55 }
  0x6e   : > { %943 = vmatpush1.bf16.msra.mxu0 %v942_v62  ;;  %v389_v62 = vld [vmem:[%s1878_s1 + $0x7a0] sm:$0xff] }
  0x6f   : > { %1007 = vmatpush1.bf16.msra.mxu1 %v1006_v63  ;;  %945 = vmatprep.subr.bf16.mxu0 %v944_v0  ;;  %v397_v63 = vld [vmem:[%s1878_s1 + $0x7e0] sm:$0xff]  ;;  %v1028_v0 = vpack.c.bf16 %v400_v58, %v392_v57 }
  0x70   : > { %1009 = vmatprep.subr.bf16.mxu1 %v1008_v4  ;;  %v966_v3 = vpack.c.bf16 %v397_v63, %v389_v62  ;;  %v1030_v4 = vpack.c.bf16 %v399_v2, %v391_v1 }
  0x72   : > { %947 = vmatpush1.bf16.msra.mxu0 %v946_v10 }
  0x73   : > { %1011 = vmatpush1.bf16.msra.mxu1 %v1010_v11  ;;  %949 = vmatprep.subr.bf16.mxu0 %v948_v12 }
  0x74   : > { %1013 = vmatprep.subr.bf16.mxu1 %v1012_v17 }
  0x76   : > { %951 = vmatpush1.bf16.msra.mxu0 %v950_v24 }
  0x77   : > { %1015 = vmatpush1.bf16.msra.mxu1 %v1014_v25  ;;  %953 = vmatprep.subr.bf16.mxu0 %v952_v26 }
  0x78   : > { %1017 = vmatprep.subr.bf16.mxu1 %v1016_v30 }
  0x7a   : > { %955 = vmatpush1.bf16.msra.mxu0 %v954_v36 }
  0x7b   : > { %1019 = vmatpush1.bf16.msra.mxu1 %v1018_v37  ;;  %957 = vmatprep.subr.bf16.mxu0 %v956_v38 }
  0x7c   : > { %1021 = vmatprep.subr.bf16.mxu1 %v1020_v42 }
  0x7e   : > { %959 = vmatpush1.bf16.msra.mxu0 %v958_v19 }
  0x7f   : > { %1023 = vmatpush1.bf16.msra.mxu1 %v1022_v48  ;;  %961 = vmatprep.subr.bf16.mxu0 %v960_v49 }
  0x80   : > { %1025 = vmatprep.subr.bf16.mxu1 %v1024_v53 }
  0x82   : > { %963 = vmatpush1.bf16.msra.mxu0 %v962_v59 }
  0x83   : > { %1027 = vmatpush1.bf16.msra.mxu1 %v1026_v60  ;;  %965 = vmatprep.subr.bf16.mxu0 %v964_v61 }
  0x84   : > { %1029 = vmatprep.subr.bf16.mxu1 %v1028_v0 }
  0x86   : > { %967 = vmatpush1.bf16.msra.mxu0 %v966_v3 }
  0x87   : > { %1031 = vmatpush1.bf16.msra.mxu1 %v1030_v4 }
  0x89   : > { %611 = vmatmul.mubr.f32.vlgmr.msra.gmra.mrb[2].mxu0 %v1382_v16 }
  0x8a   : > { %682 = vmatmul.mubr.f32.vlgmr.msra.gmra.mrb[2].mxu1 %v1382_v16 }
 0x11c   : > { %v470_v5 = vpop.f32.mrb[0].mxu0 }
 0x11d   : > { %v541_v6 = vpop.f32.mrb[0].mxu1  ;;  %v472_v7 = vpop.f32.mrb[1].mxu0 }
 0x11e   : > { %v696_v8 = vcombine.low %v470_v5, %v472_v7  ;;  %v543_v9 = vpop.f32.mrb[1].mxu1 }
 0x11f   : > { %v697_v10 = vcombine.low %v541_v6, %v543_v9 }
 0x120   : > { %704 = vst [vmem:[%s143_s11] sm:$0xff] %v696_v8 }
 0x121   : > { %705 = vst [vmem:[%s143_s11 + $0x8] sm:$0xff] %v697_v10 }
 0x15c   : > { %v612_v11 = vpop.f32.mrb[2].mxu0 }
 0x15d   : > { %v683_v12 = vpop.f32.mrb[2].mxu1  ;;  %v614_v13 = vpop.f32.mrb[3].mxu0 }
 0x15e   : > { %v698_v14 = vcombine.low %v612_v11, %v614_v13  ;;  %v685_v15 = vpop.f32.mrb[3].mxu1 }
 0x15f   : > { %v699_v17 = vcombine.low %v683_v12, %v685_v15 }
 0x160   : > { %706 = vst [vmem:[%s143_s11 + $0x10] sm:$0xff] %v698_v14 }
 0x161   : > { %707 = vst [vmem:[%s143_s11 + $0x18] sm:$0xff] %v699_v17 }
 0x162 PF: > { %s12_s9 = sadd.s32 1, %s1047_s9  }
 0x163   : > { %p9_p4 = scmp.ge.s32.totalorder %s12_s9, 4  }
 0x165   :  { %11 = sbr.rel (!%p9_p4) target bundleno = 1 (0x1), region = 58 }

</bundles_post_ra>
